<compile_context>
chip_gen: v7x
topology: tpu7x:2x2x1
jax: 0.10.0
libtpu: 0.0.40
codegen_flags: <defaults>
</compile_context>

<pallas_src>
import functools

import numpy as np
import jax
import jax.numpy as jnp
from jax import lax
from jax.experimental import pallas as pl
from jax.experimental.pallas import tpu as pltpu

# For production channel counts flip to jnp.bfloat16 (v6e/v7x MXU bf16 rate,
# half the weight/tap bytes; accumulation stays f32).  Kept at f32 here so the
# 1e-3 correctness check against the f32 reference stays tight.
MXU_DTYPE = jnp.float32
SUBLANE = 8          # f32 sublane width (use 16 if running bf16 end-to-end)
LANE = 128


def _round_up(x, m):
    return (x + m - 1) // m * m


# ----------------------------- kernel ---------------------------------------


def _conv3x3_bn_prelu(p, mask_ref, w_ref, s_ref, t_ref, alpha, *, Wp, fuse_k):
    """One ConvLayer on a channels-first (C, Mt) activation tile.

    p        : (C, Mt) activation (C sublane-padded)
    mask_ref : (8, Mt) precomputed border-validity masks (taps != center)
    w_ref    : (Cout, 9*C) flattened conv taps, column = k*C + c, k = kh*3+kw
    s_ref/t_ref : (Cout, 1) folded BN scale / shift (conv bias included)
    alpha    : scalar PReLU slope (from SMEM)
    """
    C, Mt = p.shape
    Cout = w_ref.shape[0]

    def tap(k):
        dy, dx = k // 3 - 1, k % 3 - 1
        if dy == 0 and dx == 0:
            return p
        shift = dy * Wp + dx
        # rolled[:, m] = p[:, m + shift]  (lane roll on the XLU)
        rolled = pltpu.roll(p, shift=(-shift) % Mt, axis=1)
        mrow = k if k < 4 else k - 1            # center tap has no mask row
        return rolled * mask_ref[mrow:mrow + 1, :]

    if fuse_k:
        # Tiny channel counts: one fused-K matmul (K = 9*C).  Taps are
        # concatenated as values; no VMEM scratch, no extra store/reload.
        patches = jnp.concatenate([tap(k) for k in range(9)], axis=0)  # (9C, Mt)
        lhs, rhs = w_ref[...], patches
        if MXU_DTYPE != jnp.float32:
            lhs, rhs = lhs.astype(MXU_DTYPE), rhs.astype(MXU_DTYPE)
        acc = jnp.dot(lhs, rhs, preferred_element_type=jnp.float32)
    else:
        # Production channel counts: 9 per-tap matmuls accumulated in f32.
        # XLU roll / VPU mask of tap k+1 overlaps the MXU matmul of tap k.
        acc = jnp.zeros((Cout, Mt), jnp.float32)
        for k in range(9):
            lhs = w_ref[:, k * C:(k + 1) * C]
            rhs = tap(k)
            if MXU_DTYPE != jnp.float32:
                lhs, rhs = lhs.astype(MXU_DTYPE), rhs.astype(MXU_DTYPE)
            acc = acc + jnp.dot(lhs, rhs, preferred_element_type=jnp.float32)

    y = acc * s_ref[...] + t_ref[...]                 # folded bias + BatchNorm
    return jnp.where(y >= 0.0, y, y * alpha)          # PReLU (shared alpha)


def _down_kernel(mask_ref, x_ref, w1_ref, s1_ref, t1_ref,
                 w2_ref, s2_ref, t2_ref, alphas_ref, o_ref,
                 *, Wp, fuse1, fuse2):
    # x_ref : (Cin_p, Mt) already max-pooled, channels-first lane columns
    # o_ref : (Cout_p, Mt) lane-dense output tile
    y = _conv3x3_bn_prelu(x_ref[...], mask_ref, w1_ref, s1_ref, t1_ref,
                          alphas_ref[0], Wp=Wp, fuse_k=fuse1)
    z = _conv3x3_bn_prelu(y, mask_ref, w2_ref, s2_ref, t2_ref,
                          alphas_ref[1], Wp=Wp, fuse_k=fuse2)
    o_ref[...] = z.astype(o_ref.dtype)


# ----------------------------- wrapper ---------------------------------------


def _border_masks(Hp, Wp, imgs_per_tile):
    """(8, Mt) f32 validity masks for the 8 non-center taps of one M-tile."""
    cols = imgs_per_tile * Hp * Wp
    lane = np.arange(cols)
    h = (lane // Wp) % Hp
    w = lane % Wp
    rows = []
    for k in range(9):
        dy, dx = k // 3 - 1, k % 3 - 1
        if dy == 0 and dx == 0:
            continue
        valid = ((h + dy >= 0) & (h + dy < Hp) & (w + dx >= 0) & (w + dx < Wp))
        rows.append(valid.astype(np.float32))
    return jnp.asarray(np.stack(rows, axis=0))


def _pick_imgs_per_tile(N, img_cols, target_cols):
    """Whole-image M tiles: d | N and (d*img_cols) % 128 == 0 (or d == N)."""
    feasible = [d for d in range(1, N + 1)
                if N % d == 0 and ((d * img_cols) % LANE == 0 or d == N)]
    under = [d for d in feasible if d * img_cols <= target_cols]
    return max(under) if under else min(feasible)


def prepare_params(raw, eps=1e-5):
    """Fold conv bias + eval-mode BN, pad channels, flatten weights."""
    (w1, b1, g1, be1, m1, v1, a1, w2, b2, g2, be2, m2, v2, a2) = raw
    Cout, Cin = w1.shape[0], w1.shape[1]
    Cin_p = _round_up(Cin, SUBLANE)
    Cout_p = _round_up(Cout, SUBLANE)

    def fold(w_oihw, b, g, be, m, v, cin_p, cout_p):
        co, ci = w_oihw.shape[0], w_oihw.shape[1]
        scale = g / jnp.sqrt(v + eps)
        shift = (b - m) * scale + be
        w_cf = jnp.transpose(w_oihw, (0, 2, 3, 1))                    # (co,3,3,ci)
        w_cf = jnp.pad(w_cf, ((0, cout_p - co), (0, 0), (0, 0), (0, cin_p - ci)))
        w_cf = w_cf.reshape(cout_p, 9 * cin_p).astype(MXU_DTYPE)
        scale = jnp.pad(scale, (0, cout_p - co))[:, None].astype(jnp.float32)
        shift = jnp.pad(shift, (0, cout_p - co))[:, None].astype(jnp.float32)
        return w_cf, scale, shift

    wk1, s1, t1 = fold(w1, b1, g1, be1, m1, v1, Cin_p, Cout_p)
    wk2, s2, t2 = fold(w2, b2, g2, be2, m2, v2, Cout_p, Cout_p)
    alphas = jnp.stack([jnp.asarray(a1, jnp.float32).reshape(()),
                        jnp.asarray(a2, jnp.float32).reshape(())])
    return (wk1, s1, t1, wk2, s2, t2, alphas), Cout


def down_forward(x_nchw, params, *, out_channels,
                 target_tile_cols=2048, force_per_tap=False):
    """Down.forward.  `target_tile_cols`: ~2048 lane columns per tile on
    v5e/v6e; use ~1024 on v7x (64 MiB VMEM, 2 TensorCores share the grid)."""
    (wk1, s1, t1, wk2, s2, t2, alphas) = params
    N, Cin, H, W = x_nchw.shape
    assert H % 2 == 0 and W % 2 == 0, "MaxPool2d(2) needs even H and W"
    Hp, Wp = H // 2, W // 2
    img_cols = Hp * Wp
    M = N * img_cols
    Cout_p = wk1.shape[0]
    Cin_p = wk1.shape[1] // 9
    assert Cin <= Cin_p

    # MaxPool2d(2) fused with the NCHW -> channels-first-column layout change
    # (one XLA fusion; kernel input DMA is (Cin_p, M), 4x less than pre-pool).
    xp = x_nchw.reshape(N, Cin, Hp, 2, Wp, 2).max(axis=(3, 5))        # (N,Cin,Hp,Wp)
    if Cin_p > Cin:
        xp = jnp.pad(xp, ((0, 0), (0, Cin_p - Cin), (0, 0), (0, 0)))
    xcols = xp.transpose(1, 0, 2, 3).reshape(Cin_p, M)                # col = n*Hp*Wp+h*Wp+w

    # Tile M at whole-image boundaries (rolls wrap within a tile; h/w masks
    # kill every wrapped tap, so whole-image tiles stay exact).
    imgs_per_tile = _pick_imgs_per_tile(N, img_cols, target_tile_cols)
    Mt = imgs_per_tile * img_cols
    num_tiles = M // Mt

    masks = _border_masks(Hp, Wp, imgs_per_tile)                      # (8, Mt)

    fuse1 = (not force_per_tap) and (9 * Cin_p <= 256)
    fuse2 = (not force_per_tap) and (9 * Cout_p <= 256)
    kernel = functools.partial(_down_kernel, Wp=Wp, fuse1=fuse1, fuse2=fuse2)

    def resident(shape):
        return pl.BlockSpec(tuple(shape), lambda i: (0,) * len(shape))

    out = pl.pallas_call(
        kernel,
        out_shape=jax.ShapeDtypeStruct((Cout_p, M), jnp.float32),
        grid_spec=pltpu.PrefetchScalarGridSpec(
            num_scalar_prefetch=0,
            grid=(num_tiles,),
            in_specs=[
                resident((8, Mt)),                                    # border masks
                pl.BlockSpec((Cin_p, Mt), lambda i: (0, i)),          # pooled input tile
                resident(wk1.shape), resident(s1.shape), resident(t1.shape),
                resident(wk2.shape), resident(s2.shape), resident(t2.shape),
                pl.BlockSpec(memory_space=pltpu.MemorySpace.SMEM),    # PReLU alphas
            ],
            out_specs=pl.BlockSpec((Cout_p, Mt), lambda i: (0, i)),
        ),
        compiler_params=pltpu.CompilerParams(
            dimension_semantics=("parallel",)),
    )(masks, xcols, wk1, s1, t1, wk2, s2, t2, alphas)

    # (Cout_p, N*Hp*Wp) -> NCHW, dropping channel padding.
    # TODO(synk): when chaining Down blocks, keep the (Cout, M) column layout
    # between stages and skip this transpose (it is a full HBM pass).
    return out[:out_channels].reshape(out_channels, N, Hp, Wp).transpose(1, 0, 2, 3)


# ----------------------------- reference -------------------------------------


def _ref_down(x, raw):
    """Pure-JAX reference (eval-mode BN), used only for the correctness check."""
    (w1, b1, g1, be1, m1, v1, a1, w2, b2, g2, be2, m2, v2, a2) = raw
    N, C, H, W = x.shape
    xp = x.reshape(N, C, H // 2, 2, W // 2, 2).max(axis=(3, 5))

    def convlayer(z, w, b, g, be, m, v, a, eps=1e-5):
        z = lax.conv_general_dilated(
            z, w, (1, 1), ((1, 1), (1, 1)),
            dimension_numbers=("NCHW", "OIHW", "NCHW"))
        z = z + b[None, :, None, None]
        z = (z - m[None, :, None, None]) / jnp.sqrt(
            v[None, :, None, None] + eps) * g[None, :, None, None] \
            + be[None, :, None, None]
        return jnp.where(z >= 0.0, z, a * z)

    z = convlayer(xp, w1, b1, g1, be1, m1, v1, a1)
    return convlayer(z, w2, b2, g2, be2, m2, v2, a2)


if __name__ == "__main__":
    N, Cin, H, W = 2, 4, 16, 16
    Cout = 8
    key = jax.random.PRNGKey(0)
    ks = jax.random.split(key, 16)

    x = jax.random.normal(ks[0], (N, Cin, H, W), jnp.float32)

    def uinit(k, shape, fan_in):
        bnd = 1.0 / float(fan_in) ** 0.5
        return jax.random.uniform(k, shape, jnp.float32, -bnd, bnd)

    # ConvLayer 1: Conv2d(Cin, Cout, 3, 1, 1) + BatchNorm2d(Cout) + PReLU()
    w1 = uinit(ks[1], (Cout, Cin, 3, 3), Cin * 9)
    b1 = uinit(ks[2], (Cout,), Cin * 9)
    g1 = 1.0 + 0.1 * jax.random.normal(ks[3], (Cout,), jnp.float32)
    be1 = 0.1 * jax.random.normal(ks[4], (Cout,), jnp.float32)
    m1 = 0.1 * jax.random.normal(ks[5], (Cout,), jnp.float32)
    v1 = jnp.abs(jax.random.normal(ks[6], (Cout,), jnp.float32)) + 0.5
    a1 = jnp.float32(0.25)                     # nn.PReLU() default init

    # ConvLayer 2: Conv2d(Cout, Cout, 3, 1, 1) + BatchNorm2d(Cout) + PReLU()
    w2 = uinit(ks[7], (Cout, Cout, 3, 3), Cout * 9)
    b2 = uinit(ks[8], (Cout,), Cout * 9)
    g2 = 1.0 + 0.1 * jax.random.normal(ks[9], (Cout,), jnp.float32)
    be2 = 0.1 * jax.random.normal(ks[10], (Cout,), jnp.float32)
    m2 = 0.1 * jax.random.normal(ks[11], (Cout,), jnp.float32)
    v2 = jnp.abs(jax.random.normal(ks[12], (Cout,), jnp.float32)) + 0.5
    a2 = jnp.float32(0.25)

    raw = (w1, b1, g1, be1, m1, v1, a1, w2, b2, g2, be2, m2, v2, a2)
    params, out_ch = prepare_params(raw)
    ref = _ref_down(x, raw)

    # Fused-K path (auto-selected at these tiny channel counts).
    fwd = jax.jit(functools.partial(down_forward, out_channels=out_ch))
    out = jax.block_until_ready(fwd(x, params))
    assert out.shape == (N, Cout, H // 2, W // 2), out.shape
    err = float(jnp.max(jnp.abs(out - ref)))
    assert jnp.allclose(out, ref, atol=1e-3, rtol=1e-3), f"max err {err}"

    # Also exercise the production per-tap-accumulation matmul path.
    fwd_pt = jax.jit(functools.partial(down_forward, out_channels=out_ch,
                                       force_per_tap=True))
    out_pt = jax.block_until_ready(fwd_pt(x, params))
    err_pt = float(jnp.max(jnp.abs(out_pt - ref)))
    assert jnp.allclose(out_pt, ref, atol=1e-3, rtol=1e-3), f"max err {err_pt}"

    print("KERNEL_OK")
</pallas_src>

<mosaic_0001>
module attributes {stable_mosaic.version = 11 : i64} {
  func.func @_down_kernel(%arg0: i32, %arg1: memref<8x128xf32, #tpu.memory_space<vmem>>, %arg2: memref<8x128xf32, #tpu.memory_space<vmem>>, %arg3: memref<8x72xf32, #tpu.memory_space<vmem>>, %arg4: memref<8x1xf32, #tpu.memory_space<vmem>>, %arg5: memref<8x1xf32, #tpu.memory_space<vmem>>, %arg6: memref<8x72xf32, #tpu.memory_space<vmem>>, %arg7: memref<8x1xf32, #tpu.memory_space<vmem>>, %arg8: memref<8x1xf32, #tpu.memory_space<vmem>>, %arg9: memref<2xf32, #tpu.memory_space<smem>>, %arg10: memref<8x128xf32, #tpu.memory_space<vmem>>) attributes {dimension_semantics = [#tpu.dimension_semantics<parallel>], iteration_bounds = array<i64: 1>, scalar_prefetch = 0 : i64, scratch_operands = 0 : i64, tpu.core_type = #tpu.core_type<tc>, window_params = [{pipeline_mode = #tpu.pipeline_mode<synchronous>, transform_indices = @transform_0, window_bounds = array<i64: 8, 128>}, {transform_indices = @transform_1, window_bounds = array<i64: 8, 128>}, {pipeline_mode = #tpu.pipeline_mode<synchronous>, transform_indices = @transform_2, window_bounds = array<i64: 8, 72>}, {pipeline_mode = #tpu.pipeline_mode<synchronous>, transform_indices = @transform_3, window_bounds = array<i64: 8, 1>}, {pipeline_mode = #tpu.pipeline_mode<synchronous>, transform_indices = @transform_4, window_bounds = array<i64: 8, 1>}, {pipeline_mode = #tpu.pipeline_mode<synchronous>, transform_indices = @transform_5, window_bounds = array<i64: 8, 72>}, {pipeline_mode = #tpu.pipeline_mode<synchronous>, transform_indices = @transform_6, window_bounds = array<i64: 8, 1>}, {pipeline_mode = #tpu.pipeline_mode<synchronous>, transform_indices = @transform_7, window_bounds = array<i64: 8, 1>}, {transform_indices = @transform_8, window_bounds = array<i64: 2>}, {transform_indices = @transform_9, window_bounds = array<i64: 8, 128>}]} {
    %c0 = arith.constant 0 : index
    %c0_0 = arith.constant 0 : index
    %0 = vector.load %arg2[%c0, %c0_0] : memref<8x128xf32, #tpu.memory_space<vmem>>, vector<8x128xf32>
    %c0_1 = arith.constant 0 : index
    %1 = memref.load %arg9[%c0_1] : memref<2xf32, #tpu.memory_space<smem>>
    %c9_i32 = arith.constant 9 : i32
    %2 = tpu.dynamic_rotate %0 by %c9_i32 dim 1 : vector<8x128xf32>, i32 -> vector<8x128xf32>
    %c0_2 = arith.constant 0 : index
    %c0_3 = arith.constant 0 : index
    %3 = vector.load %arg1[%c0_2, %c0_3] : memref<8x128xf32, #tpu.memory_space<vmem>>, vector<1x128xf32>
    %4 = vector.broadcast %3 : vector<1x128xf32> to vector<8x128xf32>
    %5 = arith.mulf %2, %4 : vector<8x128xf32>
    %c8_i32 = arith.constant 8 : i32
    %6 = tpu.dynamic_rotate %0 by %c8_i32 dim 1 : vector<8x128xf32>, i32 -> vector<8x128xf32>
    %c1 = arith.constant 1 : index
    %c0_4 = arith.constant 0 : index
    %7 = vector.load %arg1[%c1, %c0_4] : memref<8x128xf32, #tpu.memory_space<vmem>>, vector<1x128xf32>
    %8 = vector.broadcast %7 : vector<1x128xf32> to vector<8x128xf32>
    %9 = arith.mulf %6, %8 : vector<8x128xf32>
    %c7_i32 = arith.constant 7 : i32
    %10 = tpu.dynamic_rotate %0 by %c7_i32 dim 1 : vector<8x128xf32>, i32 -> vector<8x128xf32>
    %c2 = arith.constant 2 : index
    %c0_5 = arith.constant 0 : index
    %11 = vector.load %arg1[%c2, %c0_5] : memref<8x128xf32, #tpu.memory_space<vmem>>, vector<1x128xf32>
    %12 = vector.broadcast %11 : vector<1x128xf32> to vector<8x128xf32>
    %13 = arith.mulf %10, %12 : vector<8x128xf32>
    %c1_i32 = arith.constant 1 : i32
    %14 = tpu.dynamic_rotate %0 by %c1_i32 dim 1 : vector<8x128xf32>, i32 -> vector<8x128xf32>
    %c3 = arith.constant 3 : index
    %c0_6 = arith.constant 0 : index
    %15 = vector.load %arg1[%c3, %c0_6] : memref<8x128xf32, #tpu.memory_space<vmem>>, vector<1x128xf32>
    %16 = vector.broadcast %15 : vector<1x128xf32> to vector<8x128xf32>
    %17 = arith.mulf %14, %16 : vector<8x128xf32>
    %c127_i32 = arith.constant 127 : i32
    %18 = tpu.dynamic_rotate %0 by %c127_i32 dim 1 : vector<8x128xf32>, i32 -> vector<8x128xf32>
    %c4 = arith.constant 4 : index
    %c0_7 = arith.constant 0 : index
    %19 = vector.load %arg1[%c4, %c0_7] : memref<8x128xf32, #tpu.memory_space<vmem>>, vector<1x128xf32>
    %20 = vector.broadcast %19 : vector<1x128xf32> to vector<8x128xf32>
    %21 = arith.mulf %18, %20 : vector<8x128xf32>
    %c121_i32 = arith.constant 121 : i32
    %22 = tpu.dynamic_rotate %0 by %c121_i32 dim 1 : vector<8x128xf32>, i32 -> vector<8x128xf32>
    %c5 = arith.constant 5 : index
    %c0_8 = arith.constant 0 : index
    %23 = vector.load %arg1[%c5, %c0_8] : memref<8x128xf32, #tpu.memory_space<vmem>>, vector<1x128xf32>
    %24 = vector.broadcast %23 : vector<1x128xf32> to vector<8x128xf32>
    %25 = arith.mulf %22, %24 : vector<8x128xf32>
    %c120_i32 = arith.constant 120 : i32
    %26 = tpu.dynamic_rotate %0 by %c120_i32 dim 1 : vector<8x128xf32>, i32 -> vector<8x128xf32>
    %c6 = arith.constant 6 : index
    %c0_9 = arith.constant 0 : index
    %27 = vector.load %arg1[%c6, %c0_9] : memref<8x128xf32, #tpu.memory_space<vmem>>, vector<1x128xf32>
    %28 = vector.broadcast %27 : vector<1x128xf32> to vector<8x128xf32>
    %29 = arith.mulf %26, %28 : vector<8x128xf32>
    %c119_i32 = arith.constant 119 : i32
    %30 = tpu.dynamic_rotate %0 by %c119_i32 dim 1 : vector<8x128xf32>, i32 -> vector<8x128xf32>
    %c7 = arith.constant 7 : index
    %c0_10 = arith.constant 0 : index
    %31 = vector.load %arg1[%c7, %c0_10] : memref<8x128xf32, #tpu.memory_space<vmem>>, vector<1x128xf32>
    %32 = vector.broadcast %31 : vector<1x128xf32> to vector<8x128xf32>
    %33 = arith.mulf %30, %32 : vector<8x128xf32>
    %34 = tpu.concatenate %5, %9, %13, %17, %0, %21, %25, %29, %33 in 0 : vector<8x128xf32>, vector<8x128xf32>, vector<8x128xf32>, vector<8x128xf32>, vector<8x128xf32>, vector<8x128xf32>, vector<8x128xf32>, vector<8x128xf32>, vector<8x128xf32> -> vector<72x128xf32>
    %c0_11 = arith.constant 0 : index
    %c0_12 = arith.constant 0 : index
    %35 = vector.load %arg3[%c0_11, %c0_12] : memref<8x72xf32, #tpu.memory_space<vmem>>, vector<8x72xf32>
    %cst = arith.constant dense<0.000000e+00> : vector<8x128xf32>
    %36 = tpu.matmul %35, %34, %cst {dimension_numbers = #tpu.dot_dimension_numbers<[1], [0], [0], [1], [0, 0, 1, 1], [], []>} : vector<8x72xf32>, vector<72x128xf32>, vector<8x128xf32> -> vector<8x128xf32>
    %c0_13 = arith.constant 0 : index
    %c0_14 = arith.constant 0 : index
    %37 = vector.load %arg4[%c0_13, %c0_14] : memref<8x1xf32, #tpu.memory_space<vmem>>, vector<8x1xf32>
    %38 = vector.broadcast %37 : vector<8x1xf32> to vector<8x128xf32>
    %39 = arith.mulf %36, %38 : vector<8x128xf32>
    %c0_15 = arith.constant 0 : index
    %c0_16 = arith.constant 0 : index
    %40 = vector.load %arg5[%c0_15, %c0_16] : memref<8x1xf32, #tpu.memory_space<vmem>>, vector<8x1xf32>
    %41 = vector.broadcast %40 : vector<8x1xf32> to vector<8x128xf32>
    %42 = arith.addf %39, %41 : vector<8x128xf32>
    %cst_17 = arith.constant 0.000000e+00 : f32
    %43 = vector.broadcast %cst_17 : f32 to vector<8x128xf32>
    %44 = arith.cmpf oge, %42, %43 : vector<8x128xf32>
    %45 = vector.broadcast %1 : f32 to vector<8x128xf32>
    %46 = arith.mulf %42, %45 : vector<8x128xf32>
    %47 = arith.select %44, %42, %46 : vector<8x128xi1>, vector<8x128xf32>
    %c1_18 = arith.constant 1 : index
    %48 = memref.load %arg9[%c1_18] : memref<2xf32, #tpu.memory_space<smem>>
    %c9_i32_19 = arith.constant 9 : i32
    %49 = tpu.dynamic_rotate %47 by %c9_i32_19 dim 1 : vector<8x128xf32>, i32 -> vector<8x128xf32>
    %c0_20 = arith.constant 0 : index
    %c0_21 = arith.constant 0 : index
    %50 = vector.load %arg1[%c0_20, %c0_21] : memref<8x128xf32, #tpu.memory_space<vmem>>, vector<1x128xf32>
    %51 = vector.broadcast %50 : vector<1x128xf32> to vector<8x128xf32>
    %52 = arith.mulf %49, %51 : vector<8x128xf32>
    %c8_i32_22 = arith.constant 8 : i32
    %53 = tpu.dynamic_rotate %47 by %c8_i32_22 dim 1 : vector<8x128xf32>, i32 -> vector<8x128xf32>
    %c1_23 = arith.constant 1 : index
    %c0_24 = arith.constant 0 : index
    %54 = vector.load %arg1[%c1_23, %c0_24] : memref<8x128xf32, #tpu.memory_space<vmem>>, vector<1x128xf32>
    %55 = vector.broadcast %54 : vector<1x128xf32> to vector<8x128xf32>
    %56 = arith.mulf %53, %55 : vector<8x128xf32>
    %c7_i32_25 = arith.constant 7 : i32
    %57 = tpu.dynamic_rotate %47 by %c7_i32_25 dim 1 : vector<8x128xf32>, i32 -> vector<8x128xf32>
    %c2_26 = arith.constant 2 : index
    %c0_27 = arith.constant 0 : index
    %58 = vector.load %arg1[%c2_26, %c0_27] : memref<8x128xf32, #tpu.memory_space<vmem>>, vector<1x128xf32>
    %59 = vector.broadcast %58 : vector<1x128xf32> to vector<8x128xf32>
    %60 = arith.mulf %57, %59 : vector<8x128xf32>
    %c1_i32_28 = arith.constant 1 : i32
    %61 = tpu.dynamic_rotate %47 by %c1_i32_28 dim 1 : vector<8x128xf32>, i32 -> vector<8x128xf32>
    %c3_29 = arith.constant 3 : index
    %c0_30 = arith.constant 0 : index
    %62 = vector.load %arg1[%c3_29, %c0_30] : memref<8x128xf32, #tpu.memory_space<vmem>>, vector<1x128xf32>
    %63 = vector.broadcast %62 : vector<1x128xf32> to vector<8x128xf32>
    %64 = arith.mulf %61, %63 : vector<8x128xf32>
    %c127_i32_31 = arith.constant 127 : i32
    %65 = tpu.dynamic_rotate %47 by %c127_i32_31 dim 1 : vector<8x128xf32>, i32 -> vector<8x128xf32>
    %c4_32 = arith.constant 4 : index
    %c0_33 = arith.constant 0 : index
    %66 = vector.load %arg1[%c4_32, %c0_33] : memref<8x128xf32, #tpu.memory_space<vmem>>, vector<1x128xf32>
    %67 = vector.broadcast %66 : vector<1x128xf32> to vector<8x128xf32>
    %68 = arith.mulf %65, %67 : vector<8x128xf32>
    %c121_i32_34 = arith.constant 121 : i32
    %69 = tpu.dynamic_rotate %47 by %c121_i32_34 dim 1 : vector<8x128xf32>, i32 -> vector<8x128xf32>
    %c5_35 = arith.constant 5 : index
    %c0_36 = arith.constant 0 : index
    %70 = vector.load %arg1[%c5_35, %c0_36] : memref<8x128xf32, #tpu.memory_space<vmem>>, vector<1x128xf32>
    %71 = vector.broadcast %70 : vector<1x128xf32> to vector<8x128xf32>
    %72 = arith.mulf %69, %71 : vector<8x128xf32>
    %c120_i32_37 = arith.constant 120 : i32
    %73 = tpu.dynamic_rotate %47 by %c120_i32_37 dim 1 : vector<8x128xf32>, i32 -> vector<8x128xf32>
    %c6_38 = arith.constant 6 : index
    %c0_39 = arith.constant 0 : index
    %74 = vector.load %arg1[%c6_38, %c0_39] : memref<8x128xf32, #tpu.memory_space<vmem>>, vector<1x128xf32>
    %75 = vector.broadcast %74 : vector<1x128xf32> to vector<8x128xf32>
    %76 = arith.mulf %73, %75 : vector<8x128xf32>
    %c119_i32_40 = arith.constant 119 : i32
    %77 = tpu.dynamic_rotate %47 by %c119_i32_40 dim 1 : vector<8x128xf32>, i32 -> vector<8x128xf32>
    %c7_41 = arith.constant 7 : index
    %c0_42 = arith.constant 0 : index
    %78 = vector.load %arg1[%c7_41, %c0_42] : memref<8x128xf32, #tpu.memory_space<vmem>>, vector<1x128xf32>
    %79 = vector.broadcast %78 : vector<1x128xf32> to vector<8x128xf32>
    %80 = arith.mulf %77, %79 : vector<8x128xf32>
    %81 = tpu.concatenate %52, %56, %60, %64, %47, %68, %72, %76, %80 in 0 : vector<8x128xf32>, vector<8x128xf32>, vector<8x128xf32>, vector<8x128xf32>, vector<8x128xf32>, vector<8x128xf32>, vector<8x128xf32>, vector<8x128xf32>, vector<8x128xf32> -> vector<72x128xf32>
    %c0_43 = arith.constant 0 : index
    %c0_44 = arith.constant 0 : index
    %82 = vector.load %arg6[%c0_43, %c0_44] : memref<8x72xf32, #tpu.memory_space<vmem>>, vector<8x72xf32>
    %cst_45 = arith.constant dense<0.000000e+00> : vector<8x128xf32>
    %83 = tpu.matmul %82, %81, %cst_45 {dimension_numbers = #tpu.dot_dimension_numbers<[1], [0], [0], [1], [0, 0, 1, 1], [], []>} : vector<8x72xf32>, vector<72x128xf32>, vector<8x128xf32> -> vector<8x128xf32>
    %c0_46 = arith.constant 0 : index
    %c0_47 = arith.constant 0 : index
    %84 = vector.load %arg7[%c0_46, %c0_47] : memref<8x1xf32, #tpu.memory_space<vmem>>, vector<8x1xf32>
    %85 = vector.broadcast %84 : vector<8x1xf32> to vector<8x128xf32>
    %86 = arith.mulf %83, %85 : vector<8x128xf32>
    %c0_48 = arith.constant 0 : index
    %c0_49 = arith.constant 0 : index
    %87 = vector.load %arg8[%c0_48, %c0_49] : memref<8x1xf32, #tpu.memory_space<vmem>>, vector<8x1xf32>
    %88 = vector.broadcast %87 : vector<8x1xf32> to vector<8x128xf32>
    %89 = arith.addf %86, %88 : vector<8x128xf32>
    %cst_50 = arith.constant 0.000000e+00 : f32
    %90 = vector.broadcast %cst_50 : f32 to vector<8x128xf32>
    %91 = arith.cmpf oge, %89, %90 : vector<8x128xf32>
    %92 = vector.broadcast %48 : f32 to vector<8x128xf32>
    %93 = arith.mulf %89, %92 : vector<8x128xf32>
    %94 = arith.select %91, %89, %93 : vector<8x128xi1>, vector<8x128xf32>
    %c0_51 = arith.constant 0 : index
    %c0_52 = arith.constant 0 : index
    %95 = vector.load %arg10[%c0_51, %c0_52] : memref<8x128xf32, #tpu.memory_space<vmem>>, vector<8x128xf32>
    tpu.vector_store %arg10[%c0_51, %c0_52], %94 {strides = array<i32>} : memref<8x128xf32, #tpu.memory_space<vmem>>, vector<8x128xf32>,
    return
  }
  func.func @transform_0(%arg0: i32) -> (i32, i32) {
    %c0_i32 = arith.constant 0 : i32
    %c0_i32_0 = arith.constant 0 : i32
    %c0_i32_1 = arith.constant 0 : i32
    return %c0_i32, %c0_i32_0 : i32, i32
  }
  func.func @transform_1(%arg0: i32) -> (i32, i32) {
    %c0_i32 = arith.constant 0 : i32
    %c0_i32_0 = arith.constant 0 : i32
    return %c0_i32, %arg0 : i32, i32
  }
  func.func @transform_2(%arg0: i32) -> (i32, i32) {
    %c0_i32 = arith.constant 0 : i32
    %c0_i32_0 = arith.constant 0 : i32
    %c0_i32_1 = arith.constant 0 : i32
    return %c0_i32, %c0_i32_0 : i32, i32
  }
  func.func @transform_3(%arg0: i32) -> (i32, i32) {
    %c0_i32 = arith.constant 0 : i32
    %c0_i32_0 = arith.constant 0 : i32
    %c0_i32_1 = arith.constant 0 : i32
    return %c0_i32, %c0_i32_0 : i32, i32
  }
  func.func @transform_4(%arg0: i32) -> (i32, i32) {
    %c0_i32 = arith.constant 0 : i32
    %c0_i32_0 = arith.constant 0 : i32
    %c0_i32_1 = arith.constant 0 : i32
    return %c0_i32, %c0_i32_0 : i32, i32
  }
  func.func @transform_5(%arg0: i32) -> (i32, i32) {
    %c0_i32 = arith.constant 0 : i32
    %c0_i32_0 = arith.constant 0 : i32
    %c0_i32_1 = arith.constant 0 : i32
    return %c0_i32, %c0_i32_0 : i32, i32
  }
  func.func @transform_6(%arg0: i32) -> (i32, i32) {
    %c0_i32 = arith.constant 0 : i32
    %c0_i32_0 = arith.constant 0 : i32
    %c0_i32_1 = arith.constant 0 : i32
    return %c0_i32, %c0_i32_0 : i32, i32
  }
  func.func @transform_7(%arg0: i32) -> (i32, i32) {
    %c0_i32 = arith.constant 0 : i32
    %c0_i32_0 = arith.constant 0 : i32
    %c0_i32_1 = arith.constant 0 : i32
    return %c0_i32, %c0_i32_0 : i32, i32
  }
  func.func @transform_8(%arg0: i32) -> i32 {
    %c0_i32 = arith.constant 0 : i32
    %c0_i32_0 = arith.constant 0 : i32
    return %c0_i32 : i32
  }
  func.func @transform_9(%arg0: i32) -> (i32, i32) {
    %c0_i32 = arith.constant 0 : i32
    %c0_i32_0 = arith.constant 0 : i32
    return %c0_i32, %arg0 : i32, i32
  }
}

</mosaic_0001>

<bundles_post_ra>
// kernel: down_forward.1
= control target key start
LH: loop header
LB: loop body
LE: loop exit
PB: predicated region body
PF: predicated region fallthrough
CT: control target
= control target key end

     0   :  { %14 = vsyncpa [#allocation3], 0  ;;  %s621_s0 = inlined_call_operand.vmem [shape: f32[8,128], index: 0, kind: input, shape index: {}]   ;;  %s622_s1 = inlined_call_operand.vmem [shape: f32[8,128], index: 1, kind: input, shape index: {}]   ;;  %s623_s2 = inlined_call_operand.vmem [shape: f32[8,72], index: 2, kind: input, shape index: {}]   ;;  %s624_s3 = inlined_call_operand.vmem [shape: f32[8,1], index: 3, kind: input, shape index: {}]   ;;  %s625_s4 = inlined_call_operand.vmem [shape: f32[8,1], index: 4, kind: input, shape index: {}]   ;;  %s626_s5 = inlined_call_operand.vmem [shape: f32[8,72], index: 5, kind: input, shape index: {}]   ;;  %s627_s6 = inlined_call_operand.vmem [shape: f32[8,1], index: 6, kind: input, shape index: {}]   ;;  %s628_s7 = inlined_call_operand.vmem [shape: f32[8,1], index: 7, kind: input, shape index: {}]   ;;  %s629_s8 = inlined_call_operand.vmem [shape: f32[2], index: 8, kind: input, shape index: {}]   ;;  %s630_s9 = inlined_call_operand.vmem [shape: f32[8,128], index: 9, kind: output, shape index: {}]  }
   0x1   :  { %s37_s11 = sshll.u32 %s629_s8, 4  ;;  %s38_s11 = int_to_ptr.vmem [resolvable:$true] %s37_s11 }
   0x2   :  { %s439_s12 = scalar_lea.vmem %s38_s11, 16  ;;  %p444_p1 = scmp.lt.s32.totalorder %s38_s11, %s38_s11 }
   0x3   :  { %p440_p0 = scmp.ne.s32.totalorder %s38_s11, %s439_s12  ;;  %p445_p2 = scmp.lt.s32.totalorder %s439_s12, %s439_s12 }
   0x5   :  { %p446_p3 = por %p445_p2, %p444_p1 }
   0x7   :  { %p447_p4 = pnand %p446_p3, %p440_p0 }
   0x9   :  { %450 = shalt.err (!%p447_p4)
}
   0xa   :  { %s453_s13 = smov [#allocation2]  }
   0xb   :  { %40 = dma.vmem_to_smem %s38_s11, 16, %s453_s13, [#allocation3]  }
   0xc   :  { %451 = dma.done.wait [#allocation3], 16  }
   0xd   :  { %452 = vsyncadd [#allocation3], 4294967280 }
   0xe   :  { %44 = sfence }
   0xf   :  { %v45_v0 = vld [vmem:[%s622_s1] sm:$0xff]  ;;  %s454_s16 = smov 7   ;;  %s455_s8 = smov 9   ;;  %v456_v1 = vmov 0.0|0.0   ;;  %vm461_vm0 = vmmov 0   ;;  %v462_v2 = vmov 0.0  }
  0x10   :  { %63 = vrot.lane.b32.xlu1 %v45_v0, %s454_s16  ;;  %47 = vrot.lane.b32.xlu0 %v45_v0, %s455_s8  ;;  %s457_s17 = smov 1   ;;  %s458_s18 = smov 8   ;;  %v465_v3 = vmov 0   ;;  %v186_v4 = vld [vmem:[%s624_s3] sm:$0xff]  ;;  %vm112_vm1 = vcmask 588800  }
  0x11   :  { %400 = vmatprep.subr.bf16.mxu0 %v456_v1  ;;  %412 = vmatprep.subr.bf16.mxu1 %v456_v1  ;;  %s459_s19 = smov 127   ;;  %s460_s1 = smov 121   ;;  %v193_v5 = vld [vmem:[%s625_s4] sm:$0xff] }
  0x12   :  { %376 = vmatprep.mubr.msk.f32.mxu0 %vm461_vm0, %v462_v2  ;;  %397 = vmatprep.mubr.msk.f32.mxu1 %vm461_vm0, %v462_v2  ;;  %s463_s20 = smov 120   ;;  %s464_s21 = smov 119   ;;  %v543_v8 = vld [vmem:[%s621_s0] ss:$0 sm:$0xff]  ;;  %v328_v9 = vld [vmem:[%s621_s0 + $0x1] ss:$0 sm:$0xff] }
  0x13   :  { %437 = vset.pattern.permute.xlu0 %v465_v3  ;;  %438 = vset.pattern.permute.xlu1 %v465_v3  ;;  %v551_v10 = vld [vmem:[%s621_s0 + $0x2] ss:$0 sm:$0xff]  ;;  %v556_v11 = vld [vmem:[%s621_s0 + $0x3] ss:$0 sm:$0xff]  ;;  %v562_v16 = vld [vmem:[%s621_s0 + $0x4] ss:$0 sm:$0xff] }
  0x14   :  { %71 = vrot.lane.b32.xlu1 %v45_v0, %s457_s17  ;;  %55 = vrot.lane.b32.xlu0 %v45_v0, %s458_s18  ;;  %v571_v22 = vld [vmem:[%s621_s0 + $0x5] ss:$0 sm:$0xff]  ;;  %v576_v24 = vld [vmem:[%s621_s0 + $0x6] ss:$0 sm:$0xff]  ;;  %s46_s27 = sld [smem:[#allocation2]] }
  0x15   :  { %v334_v31 = vld [vmem:[%s621_s0 + $0x7] ss:$0 sm:$0xff] }
  0x16   :  { %v111_v34 = vld [vmem:[%s623_s2] sm:$0xff] }
  0x17   :  { %v310_v44 = vld [vmem:[%s628_s7] sm:$0xff] }
  0x18   :  { %79 = vrot.lane.b32.xlu0 %v45_v0, %s459_s19  ;;  %87 = vrot.lane.b32.xlu1 %v45_v0, %s460_s1  ;;  %v303_v45 = vld [vmem:[%s627_s6] sm:$0xff] }
  0x1a   :  { %v201_v40 = vstv %s46_s27 }
  0x1c   :  { %95 = vrot.lane.b32.xlu0 %v45_v0, %s463_s20  ;;  %103 = vrot.lane.b32.xlu1 %v45_v0, %s464_s21 }
  0x20   :  { %189 = vperm.xlu0 %437, %v186_v4   ;;  %196 = vperm.xlu1 %438, %v193_v5   ;;  %v229_v4 = vld [vmem:[%s626_s5] sm:$0xff] }
  0x82   :  { %v64_v6 = vpop.permute.xlu1 %63  ;;  %v48_v7 = vpop.permute.xlu0 %47 }
  0x83   :  { %v54_v14 = vmul.f32 %v543_v8, %v48_v7  ;;  %v70_v17 = vmul.f32 %v551_v10, %v64_v6 }
  0x86   :  { %v72_v12 = vpop.permute.xlu1 %71  ;;  %v56_v13 = vpop.permute.xlu0 %55 }
  0x87   :  { %v62_v15 = vmul.f32 %v328_v9, %v56_v13  ;;  %v78_v18 = vmul.f32 %v556_v11, %v72_v12 }
  0x89   :  { %v401_v19 = vpack.c.bf16 %v62_v15, %v54_v14  ;;  %v404_v25 = vpack.c.bf16 %v78_v18, %v70_v17 }
  0x8a   :  { %v80_v20 = vpop.permute.xlu0 %79  ;;  %v88_v23 = vpop.permute.xlu1 %87 }
  0x8b   :  { %402 = vmatpush3.bf16.msra.mxu0 %v401_v19  ;;  %v86_v21 = vmul.f32 %v562_v16, %v80_v20  ;;  %v94_v28 = vmul.f32 %v571_v22, %v88_v23 }
  0x8c   :  { %403 = vmatprep.subr.bf16.mxu0 %v456_v1 }
  0x8d   :  { %v407_v27 = vpack.c.bf16 %v86_v21, %v45_v0 }
  0x8e   :  { %v96_v26 = vpop.permute.xlu0 %95  ;;  %v104_v32 = vpop.permute.xlu1 %103 }
  0x8f   :  { %405 = vmatpush3.bf16.msra.mxu0 %v404_v25  ;;  %v102_v29 = vmul.f32 %v576_v24, %v96_v26  ;;  %v110_v33 = vmul.f32 %v334_v31, %v104_v32 }
  0x90   :  { %406 = vmatprep.subr.bf16.mxu0 %v456_v1 }
  0x91   :  { %v410_v30 = vpack.c.bf16 %v102_v29, %v94_v28 }
  0x93   :  { %408 = vmatpush3.bf16.msra.mxu0 %v407_v27 }
  0x94   :  { %409 = vmatprep.subr.bf16.mxu0 %v456_v1 }
  0x97   :  { %411 = vmatpush3.bf16.msra.mxu0 %v410_v30 }
  0x98   :  { %374 = vmatprep.subr.mxu0 %v462_v2 }
  0x9b   :  { %375 = vmatpush3.msra.mxu0 %v110_v33 }
  0x9c   :  { %377 = vmatmul.mubr.msk.f32.vlgmr.msra.gmra.mrb[0].mxu0 %vm112_vm1, %v111_v34 }
  0x9f   :  { %v190_v35 = vpop.permute.xlu0 %189  ;;  %v197_v37 = vpop.permute.xlu1 %196 }
 0x16f   :  { %v182_v36 = vpop.f32.mrb[0].mxu0 }
 0x170   :  { %v192_v38 = vmul.f32 %v190_v35, %v182_v36  ;;  %v378_v39 = vpop.f32.mrb[1].mxu0 }
 0x172   :  { %v199_v41 = vadd.f32 %v197_v37, %v192_v38 }
 0x174   :  { %vm200_vm2 = vcmp.ge.f32.partialorder %v199_v41, 0.0  ;;  %v202_v42 = vmul.f32 %v201_v40, %v199_v41 }
 0x176   :  { %v203_v43 = vsel %vm200_vm2, %v199_v41, %v202_v42 }
 0x177   :  { %208 = vrot.lane.b32.xlu0 %v203_v43, %s458_s18  ;;  %205 = vrot.lane.b32.xlu1 %v203_v43, %s455_s8 }
 0x17b   :  { %214 = vrot.lane.b32.xlu0 %v203_v43, %s457_s17  ;;  %211 = vrot.lane.b32.xlu1 %v203_v43, %s454_s16  ;;  %s336_s16 = sld [smem:[#allocation2 + $0x1]] }
 0x17f   :  { %220 = vrot.lane.b32.xlu0 %v203_v43, %s460_s1  ;;  %217 = vrot.lane.b32.xlu1 %v203_v43, %s459_s19 }
 0x183   :  { %226 = vrot.lane.b32.xlu0 %v203_v43, %s464_s21  ;;  %223 = vrot.lane.b32.xlu1 %v203_v43, %s463_s20 }
 0x187   :  { %313 = vperm.xlu0 %437, %v310_v44   ;;  %306 = vperm.xlu1 %438, %v303_v45  }
 0x1e9   :  { %v209_v46 = vpop.permute.xlu0 %208  ;;  %v206_v47 = vpop.permute.xlu1 %205 }
 0x1ea   :  { %v210_v48 = vmul.f32 %v328_v9, %v209_v46  ;;  %v207_v49 = vmul.f32 %v543_v8, %v206_v47 }
 0x1ec   :  { %v413_v50 = vpack.c.bf16 %v210_v48, %v207_v49 }
 0x1ed   :  { %v215_v51 = vpop.permute.xlu0 %214  ;;  %v212_v52 = vpop.permute.xlu1 %211 }
 0x1ee   :  { %v216_v53 = vmul.f32 %v556_v11, %v215_v51  ;;  %v213_v54 = vmul.f32 %v551_v10, %v212_v52  ;;  %414 = vmatpush3.bf16.msra.mxu1 %v413_v50 }
 0x1ef   :  { %415 = vmatprep.subr.bf16.mxu1 %v456_v1 }
 0x1f0   :  { %v416_v55 = vpack.c.bf16 %v216_v53, %v213_v54 }
 0x1f1   :  { %v218_v56 = vpop.permute.xlu1 %217  ;;  %v221_v58 = vpop.permute.xlu0 %220 }
 0x1f2   :  { %v219_v57 = vmul.f32 %v562_v16, %v218_v56  ;;  %417 = vmatpush3.bf16.msra.mxu1 %v416_v55  ;;  %v222_v61 = vmul.f32 %v571_v22, %v221_v58 }
 0x1f3   :  { %418 = vmatprep.subr.bf16.mxu1 %v456_v1 }
 0x1f4   :  { %v419_v59 = vpack.c.bf16 %v219_v57, %v203_v43 }
 0x1f5   :  { %v224_v60 = vpop.permute.xlu1 %223  ;;  %v227_v0 = vpop.permute.xlu0 %226 }
 0x1f6   :  { %v225_v62 = vmul.f32 %v576_v24, %v224_v60  ;;  %420 = vmatpush3.bf16.msra.mxu1 %v419_v59  ;;  %v228_v3 = vmul.f32 %v334_v31, %v227_v0 }
 0x1f7   :  { %421 = vmatprep.subr.bf16.mxu1 %v456_v1  ;;  %v318_v1 = vstv %s336_s16 }
 0x1f8   :  { %v422_v63 = vpack.c.bf16 %v225_v62, %v222_v61 }
 0x1fa   :  { %423 = vmatpush3.bf16.msra.mxu1 %v422_v63 }
 0x1fb   :  { %395 = vmatprep.subr.mxu1 %v462_v2 }
 0x1fe   :  { %396 = vmatpush3.msra.mxu1 %v228_v3 }
 0x1ff   :  { %398 = vmatmul.mubr.msk.f32.vlgmr.msra.gmra.mrb[0].mxu1 %vm112_vm1, %v229_v4 }
 0x206   :  { %v307_v5 = vpop.permute.xlu1 %306  ;;  %v314_v9 = vpop.permute.xlu0 %313 }
 0x2d2   :  { %v299_v6 = vpop.f32.mrb[0].mxu1 }
 0x2d3   :  { %v309_v7 = vmul.f32 %v307_v5, %v299_v6  ;;  %v399_v8 = vpop.f32.mrb[1].mxu1 }
 0x2d5   :  { %v316_v10 = vadd.f32 %v314_v9, %v309_v7 }
 0x2d7   :  { %vm317_vm3 = vcmp.ge.f32.partialorder %v316_v10, 0.0  ;;  %v319_v11 = vmul.f32 %v318_v1, %v316_v10 }
 0x2d9   :  { %v320_v12 = vsel %vm317_vm3, %v316_v10, %v319_v11 }
 0x2da   :  { %321 = vst [vmem:[%s630_s9] sm:$0xff] %v320_v12 }
 0x2db   :  { %326 = vsyncpa [#allocation3], 1 }

</bundles_post_ra>
